<compile_context>
chip_gen: v7x
topology: tpu7x:2x2x1
jax: 0.10.0
libtpu: 0.0.40
codegen_flags: <defaults>
</compile_context>

<pallas_src>
import math

import jax
import jax.numpy as jnp
from jax import lax
from jax.experimental import pallas as pl
from jax.experimental.pallas import tpu as pltpu

# ---- module-consistent config ---------------------------------------------
BATCH = 2
SEQ = 8            # opt.max_seq_len
HIDDEN = 32        # config.hidden_size
NUM_HEADS = 4      # config.num_attention_heads
HEAD_DIM = HIDDEN // NUM_HEADS


def _self_attention_kernel(x_ref, w_ref, b_ref, m_ref, o_ref):
    """x_ref: (3B, S, H)  x replicated for q/k/v (index = c*B + b)
       w_ref: (3B, H, H)  stacked/replicated projection weights (Q pre-scaled)
       b_ref: (3B, 1, H)  stacked/replicated biases (Q pre-scaled)
       m_ref: (nh, 1, H)  one-hot per-head lane masks
       o_ref: (B, S, H)   tanh(multi-head self-attention) output."""
    G3, S, H = x_ref.shape
    B = G3 // 3
    NH = m_ref.shape[0]
    G = B * NH

    # --- fused, batched Q/K/V projection: one dot_general, no lane slicing ---
    # (1/sqrt(head_dim) is already folded into the Q weights/bias wrapper-side)
    qkv = lax.dot_general(
        x_ref[...], w_ref[...],
        dimension_numbers=(((2,), (1,)), ((0,), (0,))),
        preferred_element_type=jnp.float32) + b_ref[...]            # (3B, S, H)
    q, k, v = qkv[:B], qkv[B:2 * B], qkv[2 * B:]                    # leading-dim slices

    # --- head structure expressed on the lane axis via one-hot masks ---------
    # Tile replication along leading dims + VPU multiplies only: no 8-lane
    # vreg subslices, no concat/stack, no in-kernel reshapes of lane/sublane dims.
    shape4 = (B, NH, S, H)
    m4 = jnp.broadcast_to(m_ref[...][None], shape4)                 # hoisted once
    qm = (jnp.broadcast_to(q[:, None], shape4) * m4).reshape(G, S, H)
    kb = jnp.broadcast_to(k[:, None], shape4).reshape(G, S, H)
    vb = jnp.broadcast_to(v[:, None], shape4).reshape(G, S, H)

    # --- one batched score matmul over the (B*NH) batch dim ------------------
    # Other heads' lanes of qm are exact zeros, so contracting the full H lane
    # axis equals the per-head head_dim contraction.
    scores = lax.dot_general(qm, kb, (((2,), (2,)), ((0,), (0,))),
                             preferred_element_type=jnp.float32)    # (G, S, S)

    # attention_mask from the module is all zeros -> intentionally omitted.
    scores = scores - jnp.max(scores, axis=-1, keepdims=True)
    e = jnp.exp(scores)
    p = e / jnp.sum(e, axis=-1, keepdims=True)        # exact divide (EUP idle anyway)

    # --- one batched context matmul, then place heads back onto lanes --------
    ctx_full = lax.dot_general(p, vb, (((2,), (1,)), ((0,), (0,))),
                               preferred_element_type=jnp.float32)  # (G, S, H)
    ctx = jnp.sum(ctx_full.reshape(shape4) * m4, axis=1)            # (B, S, H), lane-packed

    o_ref[...] = jnp.tanh(ctx).astype(o_ref.dtype)                  # single dense block store


def self_attention(x, wq, bq, wk, bk, wv, bv):
    """x: (B, S, H) f32 -> tanh(multi-head self-attention(x)) : (B, S, H) f32."""
    B, S, H = x.shape
    nh, dh = NUM_HEADS, HEAD_DIM
    scale = 1.0 / math.sqrt(dh)

    # Fold the softmax 1/sqrt(head_dim) scale into the Q projection (constant
    # prep, fused by XLA into the stack below -> no extra wrapper pass).
    w_stack = jnp.stack([wq * scale, wk, wv], axis=0)               # (3, H, H)
    b_stack = jnp.stack([bq * scale, bk, bv], axis=0)               # (3, 1, H)

    # Replicate across batch so the kernel's projection is ONE batched
    # dot_general over a single leading batch dim, with no in-kernel reshape
    # or lane slicing.  A few KiB of extra HBM traffic is irrelevant here
    # (the kernel is fixed-overhead bound).
    w_rep = jnp.broadcast_to(w_stack[:, None], (3, B, H, H)).reshape(3 * B, H, H)
    b_rep = jnp.broadcast_to(b_stack[:, None], (3, B, 1, H)).reshape(3 * B, 1, H)
    x_rep = jnp.broadcast_to(x[None], (3, B, S, H)).reshape(3 * B, S, H)

    # One-hot per-head lane masks: head selection happens with VPU multiplies
    # on the lane axis instead of 8-lane vreg slices / concat / stack.
    hmask = jnp.repeat(jnp.eye(nh, dtype=jnp.float32), dh, axis=1).reshape(nh, 1, H)

    # Single grid step on every generation (no device-kind sniffing): the whole
    # problem fits one invocation, so extra grid steps only add per-step
    # pipeline overhead and duplicated weight fetches.
    return pl.pallas_call(
        _self_attention_kernel,
        out_shape=jax.ShapeDtypeStruct((B, S, H), jnp.float32),
        grid_spec=pltpu.PrefetchScalarGridSpec(
            num_scalar_prefetch=0,
            grid=(1,),
            in_specs=[
                pl.BlockSpec((3 * B, S, H), lambda i: (0, 0, 0)),
                pl.BlockSpec((3 * B, H, H), lambda i: (0, 0, 0)),
                pl.BlockSpec((3 * B, 1, H), lambda i: (0, 0, 0)),
                pl.BlockSpec((nh, 1, H), lambda i: (0, 0, 0)),
            ],
            out_specs=pl.BlockSpec((B, S, H), lambda i: (0, 0, 0)),
        ),
        compiler_params=pltpu.CompilerParams(
            dimension_semantics=("arbitrary",)),
    )(x_rep, w_rep, b_rep, hmask)


def _reference(x, wq, bq, wk, bk, wv, bv):
    """Pure-JAX reference of BertSelfAttention(+tanh) with a zero mask."""
    B, S, H = x.shape

    def heads(t):  # (B, S, H) -> (B, nh, S, Dh)
        return t.reshape(B, S, NUM_HEADS, HEAD_DIM).transpose(0, 2, 1, 3)

    q = heads(x @ wq + bq)
    k = heads(x @ wk + bk)
    v = heads(x @ wv + bv)
    scores = jnp.einsum("bhqd,bhkd->bhqk", q, k) / math.sqrt(HEAD_DIM)
    probs = jax.nn.softmax(scores, axis=-1)
    ctx = jnp.einsum("bhqk,bhkd->bhqd", probs, v)
    ctx = ctx.transpose(0, 2, 1, 3).reshape(B, S, H)
    return jnp.tanh(ctx)


if __name__ == "__main__":
    key = jax.random.PRNGKey(0)
    kx, kq, kk, kv, kbq, kbk, kbv = jax.random.split(key, 7)

    x = jax.random.normal(kx, (BATCH, SEQ, HIDDEN), dtype=jnp.float32)

    # Deterministic synthetic parameters (nn.Linear-style, stored as (in, out)
    # so the kernel computes x @ W + b).
    init = 0.1
    wq = jax.random.uniform(kq, (HIDDEN, HIDDEN), jnp.float32, -init, init)
    wk = jax.random.uniform(kk, (HIDDEN, HIDDEN), jnp.float32, -init, init)
    wv = jax.random.uniform(kv, (HIDDEN, HIDDEN), jnp.float32, -init, init)
    bq = jax.random.uniform(kbq, (1, HIDDEN), jnp.float32, -init, init)
    bk = jax.random.uniform(kbk, (1, HIDDEN), jnp.float32, -init, init)
    bv = jax.random.uniform(kbv, (1, HIDDEN), jnp.float32, -init, init)

    out = jax.block_until_ready(self_attention(x, wq, bq, wk, bk, wv, bv))
    ref = _reference(x, wq, bq, wk, bk, wv, bv)

    assert out.shape == (BATCH, SEQ, HIDDEN)
    assert jnp.allclose(out, ref, atol=2e-5, rtol=2e-5), "mismatch vs reference"

    print("KERNEL_OK")
</pallas_src>

<mosaic_0001>
module attributes {stable_mosaic.version = 11 : i64} {
  func.func @_self_attention_kernel(%arg0: i32, %arg1: memref<6x8x32xf32, #tpu.memory_space<vmem>>, %arg2: memref<6x32x32xf32, #tpu.memory_space<vmem>>, %arg3: memref<6x1x32xf32, #tpu.memory_space<vmem>>, %arg4: memref<4x1x32xf32, #tpu.memory_space<vmem>>, %arg5: memref<2x8x32xf32, #tpu.memory_space<vmem>>) attributes {dimension_semantics = [#tpu.dimension_semantics<arbitrary>], iteration_bounds = array<i64: 1>, scalar_prefetch = 0 : i64, scratch_operands = 0 : i64, tpu.core_type = #tpu.core_type<tc>, window_params = [{pipeline_mode = #tpu.pipeline_mode<synchronous>, transform_indices = @transform_0, window_bounds = array<i64: 6, 8, 32>}, {pipeline_mode = #tpu.pipeline_mode<synchronous>, transform_indices = @transform_1, window_bounds = array<i64: 6, 32, 32>}, {pipeline_mode = #tpu.pipeline_mode<synchronous>, transform_indices = @transform_2, window_bounds = array<i64: 6, 1, 32>}, {pipeline_mode = #tpu.pipeline_mode<synchronous>, transform_indices = @transform_3, window_bounds = array<i64: 4, 1, 32>}, {pipeline_mode = #tpu.pipeline_mode<synchronous>, transform_indices = @transform_4, window_bounds = array<i64: 2, 8, 32>}]} {
    %c0 = arith.constant 0 : index
    %c0_0 = arith.constant 0 : index
    %c0_1 = arith.constant 0 : index
    %0 = vector.load %arg1[%c0, %c0_0, %c0_1] : memref<6x8x32xf32, #tpu.memory_space<vmem>>, vector<6x8x32xf32>
    %c0_2 = arith.constant 0 : index
    %c0_3 = arith.constant 0 : index
    %c0_4 = arith.constant 0 : index
    %1 = vector.load %arg2[%c0_2, %c0_3, %c0_4] : memref<6x32x32xf32, #tpu.memory_space<vmem>>, vector<6x32x32xf32>
    %cst = arith.constant dense<0.000000e+00> : vector<6x8x32xf32>
    %2 = tpu.matmul %0, %1, %cst {dimension_numbers = #tpu.dot_dimension_numbers<[2], [1], [1], [2], [0, 0, 0, 1, 1, 2], [0], [0]>} : vector<6x8x32xf32>, vector<6x32x32xf32>, vector<6x8x32xf32> -> vector<6x8x32xf32>
    %c0_5 = arith.constant 0 : index
    %c0_6 = arith.constant 0 : index
    %c0_7 = arith.constant 0 : index
    %3 = vector.load %arg3[%c0_5, %c0_6, %c0_7] : memref<6x1x32xf32, #tpu.memory_space<vmem>>, vector<6x1x32xf32>
    %4 = vector.broadcast %3 : vector<6x1x32xf32> to vector<6x8x32xf32>
    %5 = arith.addf %2, %4 : vector<6x8x32xf32>
    %6 = vector.extract_strided_slice %5 {offsets = [0, 0, 0], sizes = [2, 8, 32], strides = [1, 1, 1]} : vector<6x8x32xf32> to vector<2x8x32xf32>
    %7 = vector.extract_strided_slice %5 {offsets = [2, 0, 0], sizes = [2, 8, 32], strides = [1, 1, 1]} : vector<6x8x32xf32> to vector<2x8x32xf32>
    %8 = vector.extract_strided_slice %5 {offsets = [4, 0, 0], sizes = [2, 8, 32], strides = [1, 1, 1]} : vector<6x8x32xf32> to vector<2x8x32xf32>
    %c0_8 = arith.constant 0 : index
    %c0_9 = arith.constant 0 : index
    %c0_10 = arith.constant 0 : index
    %9 = vector.load %arg4[%c0_8, %c0_9, %c0_10] : memref<4x1x32xf32, #tpu.memory_space<vmem>>, vector<4x1x32xf32>
    %10 = vector.shape_cast %9 : vector<4x1x32xf32> to vector<1x4x1x32xf32>
    %11 = vector.shape_cast %10 : vector<1x4x1x32xf32> to vector<1x4x1x32xf32>
    %12 = vector.broadcast %11 : vector<1x4x1x32xf32> to vector<2x4x8x32xf32>
    %13 = vector.shape_cast %6 : vector<2x8x32xf32> to vector<2x1x8x32xf32>
    %14 = vector.shape_cast %13 : vector<2x1x8x32xf32> to vector<2x1x8x32xf32>
    %15 = vector.broadcast %14 : vector<2x1x8x32xf32> to vector<2x4x8x32xf32>
    %16 = arith.mulf %15, %12 : vector<2x4x8x32xf32>
    %17 = vector.shape_cast %16 : vector<2x4x8x32xf32> to vector<8x8x32xf32>
    %18 = vector.shape_cast %7 : vector<2x8x32xf32> to vector<2x1x8x32xf32>
    %19 = vector.shape_cast %18 : vector<2x1x8x32xf32> to vector<2x1x8x32xf32>
    %20 = vector.broadcast %19 : vector<2x1x8x32xf32> to vector<2x4x8x32xf32>
    %21 = vector.shape_cast %20 : vector<2x4x8x32xf32> to vector<8x8x32xf32>
    %22 = vector.shape_cast %8 : vector<2x8x32xf32> to vector<2x1x8x32xf32>
    %23 = vector.shape_cast %22 : vector<2x1x8x32xf32> to vector<2x1x8x32xf32>
    %24 = vector.broadcast %23 : vector<2x1x8x32xf32> to vector<2x4x8x32xf32>
    %25 = vector.shape_cast %24 : vector<2x4x8x32xf32> to vector<8x8x32xf32>
    %cst_11 = arith.constant dense<0.000000e+00> : vector<8x8x8xf32>
    %26 = tpu.matmul %17, %21, %cst_11 {dimension_numbers = #tpu.dot_dimension_numbers<[2], [2], [1], [1], [0, 0, 0, 1, 1, 1], [0], [0]>} : vector<8x8x32xf32>, vector<8x8x32xf32>, vector<8x8x8xf32> -> vector<8x8x8xf32>
    %cst_12 = arith.constant dense<0xFF800000> : vector<8x8xf32>
    %27 = vector.multi_reduction <maximumf>, %26, %cst_12 [2] : vector<8x8x8xf32> to vector<8x8xf32>
    %28 = vector.shape_cast %27 : vector<8x8xf32> to vector<8x8x1xf32>
    %29 = vector.broadcast %28 : vector<8x8x1xf32> to vector<8x8x8xf32>
    %30 = arith.subf %26, %29 : vector<8x8x8xf32>
    %31 = math.exp %30 : vector<8x8x8xf32>
    %cst_13 = arith.constant dense<0.000000e+00> : vector<8x8xf32>
    %32 = vector.multi_reduction <add>, %31, %cst_13 [2] : vector<8x8x8xf32> to vector<8x8xf32>
    %33 = vector.shape_cast %32 : vector<8x8xf32> to vector<8x8x1xf32>
    %34 = vector.broadcast %33 : vector<8x8x1xf32> to vector<8x8x8xf32>
    %35 = arith.divf %31, %34 : vector<8x8x8xf32>
    %cst_14 = arith.constant dense<0.000000e+00> : vector<8x8x32xf32>
    %36 = tpu.matmul %35, %25, %cst_14 {dimension_numbers = #tpu.dot_dimension_numbers<[2], [1], [1], [2], [0, 0, 0, 1, 1, 2], [0], [0]>} : vector<8x8x8xf32>, vector<8x8x32xf32>, vector<8x8x32xf32> -> vector<8x8x32xf32>
    %37 = vector.shape_cast %36 : vector<8x8x32xf32> to vector<2x4x8x32xf32>
    %38 = arith.mulf %37, %12 : vector<2x4x8x32xf32>
    %cst_15 = arith.constant dense<0.000000e+00> : vector<2x8x32xf32>
    %39 = vector.multi_reduction <add>, %38, %cst_15 [1] : vector<2x4x8x32xf32> to vector<2x8x32xf32>
    %40 = math.tanh %39 : vector<2x8x32xf32>
    %c0_16 = arith.constant 0 : index
    %c0_17 = arith.constant 0 : index
    %c0_18 = arith.constant 0 : index
    %41 = vector.load %arg5[%c0_16, %c0_17, %c0_18] : memref<2x8x32xf32, #tpu.memory_space<vmem>>, vector<2x8x32xf32>
    tpu.vector_store %arg5[%c0_16, %c0_17, %c0_18], %40 {strides = array<i32>} : memref<2x8x32xf32, #tpu.memory_space<vmem>>, vector<2x8x32xf32>,
    return
  }
  func.func @transform_0(%arg0: i32) -> (i32, i32, i32) {
    %c0_i32 = arith.constant 0 : i32
    %c0_i32_0 = arith.constant 0 : i32
    %c0_i32_1 = arith.constant 0 : i32
    %c0_i32_2 = arith.constant 0 : i32
    return %c0_i32, %c0_i32_0, %c0_i32_1 : i32, i32, i32
  }
  func.func @transform_1(%arg0: i32) -> (i32, i32, i32) {
    %c0_i32 = arith.constant 0 : i32
    %c0_i32_0 = arith.constant 0 : i32
    %c0_i32_1 = arith.constant 0 : i32
    %c0_i32_2 = arith.constant 0 : i32
    return %c0_i32, %c0_i32_0, %c0_i32_1 : i32, i32, i32
  }
  func.func @transform_2(%arg0: i32) -> (i32, i32, i32) {
    %c0_i32 = arith.constant 0 : i32
    %c0_i32_0 = arith.constant 0 : i32
    %c0_i32_1 = arith.constant 0 : i32
    %c0_i32_2 = arith.constant 0 : i32
    return %c0_i32, %c0_i32_0, %c0_i32_1 : i32, i32, i32
  }
  func.func @transform_3(%arg0: i32) -> (i32, i32, i32) {
    %c0_i32 = arith.constant 0 : i32
    %c0_i32_0 = arith.constant 0 : i32
    %c0_i32_1 = arith.constant 0 : i32
    %c0_i32_2 = arith.constant 0 : i32
    return %c0_i32, %c0_i32_0, %c0_i32_1 : i32, i32, i32
  }
  func.func @transform_4(%arg0: i32) -> (i32, i32, i32) {
    %c0_i32 = arith.constant 0 : i32
    %c0_i32_0 = arith.constant 0 : i32
    %c0_i32_1 = arith.constant 0 : i32
    %c0_i32_2 = arith.constant 0 : i32
    return %c0_i32, %c0_i32_0, %c0_i32_1 : i32, i32, i32
  }
}

</mosaic_0001>

<bundles_post_ra>
// kernel: tpu_custom_call.1
= control target key start
LH: loop header
LB: loop body
LE: loop exit
PB: predicated region body
PF: predicated region fallthrough
CT: control target
= control target key end

     0   :  { %9 = vsyncpa [#allocation3], 0  ;;  %s2569_s0 = inlined_call_operand.hbm [shape: f32[6,8,32], index: 0, kind: input, shape index: {}]   ;;  %s2570_s1 = inlined_call_operand.hbm [shape: f32[6,32,32], index: 1, kind: input, shape index: {}]   ;;  %s2571_s2 = inlined_call_operand.vmem [shape: f32[6,1,32], index: 2, kind: input, shape index: {}]   ;;  %s2572_s3 = inlined_call_operand.vmem [shape: f32[4,1,32], index: 3, kind: input, shape index: {}]   ;;  %s2573_s4 = inlined_call_operand.hbm [shape: f32[2,8,32], index: 4, kind: output, shape index: {}]  }
   0x1   :  { %10 = vsyncpa [#allocation6], 0 }
   0x2   :  { %11 = vsyncpa [#allocation4], 0  ;;  %s2300_s15 = smov [#allocation2]   ;;  %s2228_s19 = scalar_lea.hbm %s2569_s0, 768 }
   0x3   :  { %s17_s16 = sshll.u32 %s2300_s15, 4  ;;  %p2229_p0 = scmp.ne.s32.totalorder %s2569_s0, %s2228_s19  ;;  %s18_s16 = int_to_ptr.vmem [resolvable:$true] %s17_s16 }
   0x4   :  { %p2232_p1 = scmp.lt.u32.totalorder %s2228_s19, %s2569_s0 }
   0x6   :  { %p2234_p2 = pnand %p2232_p1, %p2229_p0 }
   0x8   :  { %2237 = shalt.err (!%p2234_p2)
}
   0x9   :  { %s2238_s24 = scalar_lea.vmem %s18_s16, 768  ;;  %p2243_p4 = scmp.lt.s32.totalorder %s18_s16, %s18_s16 }
   0xa   :  { %p2239_p3 = scmp.ne.s32.totalorder %s18_s16, %s2238_s24  ;;  %p2244_p5 = scmp.lt.s32.totalorder %s2238_s24, %s2238_s24 }
   0xc   :  { %p2245_p6 = por %p2244_p5, %p2243_p4 }
   0xe   :  { %p2246_p7 = pnand %p2245_p6, %p2239_p3 }
  0x10   :  { %2249 = shalt.err (!%p2246_p7)
}
  0x11   :  { %s2301_s25 = smov 128   ;;  %s2302_s26 = smov 8  }
  0x12   :  { %23 = dma.hbm_to_vmem [thread:$0]  %s2569_s0, 768, %s18_s16, [#allocation3], %s2301_s25, %s2301_s25, %s2302_s26  }
  0x13   :  { %s2303_s29 = smov [#allocation5]   ;;  %s2250_s7 = scalar_lea.hbm %s2570_s1, 3072 }
  0x14   :  { %s29_s30 = sshll.u32 %s2303_s29, 4  ;;  %p2251_p8 = scmp.ne.s32.totalorder %s2570_s1, %s2250_s7  ;;  %s30_s30 = int_to_ptr.vmem [resolvable:$true] %s29_s30 }
  0x15   :  { %p2254_p9 = scmp.lt.u32.totalorder %s2250_s7, %s2570_s1 }
  0x17   :  { %p2256_p10 = pnand %p2254_p9, %p2251_p8 }
  0x19   :  { %2259 = shalt.err (!%p2256_p10)
}
  0x1a   :  { %s2260_s12 = scalar_lea.vmem %s30_s30, 3072  ;;  %p2265_p12 = scmp.lt.s32.totalorder %s30_s30, %s30_s30 }
  0x1b   :  { %p2261_p11 = scmp.ne.s32.totalorder %s30_s30, %s2260_s12  ;;  %p2266_p13 = scmp.lt.s32.totalorder %s2260_s12, %s2260_s12 }
  0x1d   :  { %p2267_p0 = por %p2266_p13, %p2265_p12 }
  0x1f   :  { %p2268_p1 = pnand %p2267_p0, %p2261_p11 }
  0x21   :  { %2271 = shalt.err (!%p2268_p1)
}
  0x22   :  { %35 = dma.hbm_to_vmem [thread:$0]  %s2570_s1, 3072, %s30_s30, [#allocation6], %s2301_s25, %s2301_s25, %s2302_s26  }
  0x23   :  { %2294 = dma.done.wait [#allocation3], 768  }
  0x24   :  { %2295 = vsyncadd [#allocation3], 4294966528 }
  0x25   :  { %2296 = dma.done.wait [#allocation6], 3072  }
  0x26   :  { %2297 = vsyncadd [#allocation6], 4294964224  ;;  %v2304_v0 = vmov 0.0|0.0   ;;  %vm2305_vm0 = vmmov 0   ;;  %v2306_v1 = vmov 0.0   ;;  %v52_v2 = vld [vmem:[#allocation5] sm:$0xff] }
  0x27   :  { %2148 = vmatprep.subr.bf16.mxu0 %v2304_v0  ;;  %2010 = vmatprep.mubr.msk.f32.mxu0 %vm2305_vm0, %v2306_v1  ;;  %v53_v3 = vld [vmem:[#allocation5 + $0x8] sm:$0xff]  ;;  %v54_v4 = vld [vmem:[#allocation5 + $0x10] sm:$0xff]  ;;  %v55_v6 = vld [vmem:[#allocation5 + $0x18] sm:$0xff]  ;;  %vm118_vm1 = vcmask 261120   ;;  %vm1183_vm2 = vcmask 64512  }
  0x28   :  { %2154 = vmatprep.subr.bf16.mxu1 %v2304_v0  ;;  %2021 = vmatprep.mubr.msk.f32.mxu1 %vm2305_vm0, %v2306_v1  ;;  %v2149_v5 = vpack.c.bf16 %v53_v3, %v52_v2  ;;  %v56_v7 = vld [vmem:[#allocation5 + $0x20] sm:$0xff]  ;;  %v57_v8 = vld [vmem:[#allocation5 + $0x28] sm:$0xff]  ;;  %v2152_v9 = vpack.c.bf16 %v55_v6, %v54_v4  ;;  %v58_v11 = vld [vmem:[#allocation5 + $0x30] sm:$0xff] }
  0x29   :  { %v2155_v10 = vpack.c.bf16 %v57_v8, %v56_v7  ;;  %v59_v12 = vld [vmem:[#allocation5 + $0x38] sm:$0xff]  ;;  %v60_v13 = vld [vmem:[#allocation5 + $0x40] sm:$0xff]  ;;  %v61_v14 = vld [vmem:[#allocation5 + $0x48] sm:$0xff] }
  0x2a   :  { %2150 = vmatpush3.bf16.msra.mxu0 %v2149_v5  ;;  %v2158_v15 = vpack.c.bf16 %v59_v12, %v58_v11  ;;  %v64_v16 = vld [vmem:[#allocation5 + $0x60] sm:$0xff]  ;;  %v65_v17 = vld [vmem:[#allocation5 + $0x68] sm:$0xff]  ;;  %v46_v18 = vld [vmem:[#allocation2] sm:$0xff]  ;;  %v2161_v19 = vpack.c.bf16 %v61_v14, %v60_v13 }
  0x2b   :  { %2151 = vmatprep.subr.bf16.mxu0 %v2304_v0  ;;  %2156 = vmatpush3.bf16.msra.mxu1 %v2155_v10  ;;  %v62_v20 = vld [vmem:[#allocation5 + $0x50] sm:$0xff]  ;;  %v63_v21 = vld [vmem:[#allocation5 + $0x58] sm:$0xff]  ;;  %v2167_v23 = vpack.c.bf16 %v65_v17, %v64_v16  ;;  %v68_v27 = vld [vmem:[#allocation5 + $0x80] sm:$0xff] }
  0x2c   :  { %2157 = vmatprep.subr.bf16.mxu1 %v2304_v0  ;;  %v47_v22 = vld [vmem:[#allocation2 + $0x8] sm:$0xff]  ;;  %v66_v24 = vld [vmem:[#allocation5 + $0x70] sm:$0xff]  ;;  %v2164_v26 = vpack.c.bf16 %v63_v21, %v62_v20  ;;  %v69_v28 = vld [vmem:[#allocation5 + $0x88] sm:$0xff] }
  0x2d   :  { %v67_v25 = vld [vmem:[#allocation5 + $0x78] sm:$0xff]  ;;  %v72_v30 = vld [vmem:[#allocation5 + $0xa0] sm:$0xff]  ;;  %v73_v31 = vld [vmem:[#allocation5 + $0xa8] sm:$0xff]  ;;  %v2173_v33 = vpack.c.bf16 %v69_v28, %v68_v27 }
  0x2e   :  { %2153 = vmatpush3.bf16.msra.mxu0 %v2152_v9  ;;  %v2170_v29 = vpack.c.bf16 %v67_v25, %v66_v24  ;;  %v48_v32 = vld [vmem:[#allocation2 + $0x10] sm:$0xff]  ;;  %v49_v34 = vld [vmem:[#allocation2 + $0x18] sm:$0xff]  ;;  %v2179_v35 = vpack.c.bf16 %v73_v31, %v72_v30  ;;  %v70_v36 = vld [vmem:[#allocation5 + $0x90] sm:$0xff] }
  0x2f   :  { %2160 = vmatprep.subr.bf16.mxu0 %v2304_v0  ;;  %2159 = vmatpush3.bf16.msra.mxu1 %v2158_v15  ;;  %v71_v37 = vld [vmem:[#allocation5 + $0x98] sm:$0xff]  ;;  %v74_v38 = vld [vmem:[#allocation5 + $0xb0] sm:$0xff] }
  0x30   :  { %2166 = vmatprep.subr.bf16.mxu1 %v2304_v0  ;;  %v2176_v39 = vpack.c.bf16 %v71_v37, %v70_v36  ;;  %v75_v40 = vld [vmem:[#allocation5 + $0xb8] sm:$0xff]  ;;  %v50_v42 = vld [vmem:[#allocation2 + $0x20] sm:$0xff] }
  0x31   :  { %2011 = vmatmul.mubr.msk.f32.vlgmr.msra.gmra.mrb[0].mxu0 %vm118_vm1, %v46_v18  ;;  %v2182_v41 = vpack.c.bf16 %v75_v40, %v74_v38  ;;  %v51_v43 = vld [vmem:[#allocation2 + $0x28] sm:$0xff]  ;;  %v1900_v48 = vld [vmem:[%s2571_s2] ss:$0 sm:$0xff]  ;;  %v1902_v49 = vld [vmem:[%s2571_s2 + $0x2] ss:$0 sm:$0xff] }
  0x32   :  { %2162 = vmatpush3.bf16.msra.mxu0 %v2161_v19  ;;  %2032 = vmatprep.mubr.msk.f32.mxu0 %vm2305_vm0, %v2306_v1  ;;  %v2408_v52 = vld [vmem:[%s2572_s3] ss:$0 sm:$0xff]  ;;  %v2413_v53 = vld [vmem:[%s2572_s3 + $0x1] ss:$0 sm:$0xff]  ;;  %v1903_v60 = vld [vmem:[%s2571_s2 + $0x3] ss:$0 sm:$0xff] }
  0x33   :  { %2163 = vmatprep.subr.bf16.mxu0 %v2304_v0  ;;  %2022 = vmatmul.mubr.msk.f32.vlgmr.msra.gmra.mrb[0].mxu1 %vm118_vm1, %v47_v22  ;;  %v2427_v61 = vld [vmem:[%s2572_s3 + $0x2] ss:$0 sm:$0xff]  ;;  %v2432_v62 = vld [vmem:[%s2572_s3 + $0x3] ss:$0 sm:$0xff]  ;;  %v1901_v63 = vld [vmem:[%s2571_s2 + $0x1] ss:$0 sm:$0xff] }
  0x34   :  { %2168 = vmatpush3.bf16.msra.mxu1 %v2167_v23  ;;  %2043 = vmatprep.mubr.msk.f32.mxu1 %vm2305_vm0, %v2306_v1  ;;  %v1904_v9 = vld [vmem:[%s2571_s2 + $0x4] ss:$0 sm:$0xff] }
  0x35   :  { %2169 = vmatprep.subr.bf16.mxu1 %v2304_v0 }
  0x36   :  { %2165 = vmatpush3.bf16.msra.mxu0 %v2164_v26 }
  0x37   :  { %2172 = vmatprep.subr.bf16.mxu0 %v2304_v0 }
  0x38   :  { %2171 = vmatpush3.bf16.msra.mxu1 %v2170_v29 }
  0x39   :  { %2033 = vmatmul.mubr.msk.f32.vlgmr.msra.gmra.mrb[2].mxu0 %vm118_vm1, %v48_v32  ;;  %2178 = vmatprep.subr.bf16.mxu1 %v2304_v0 }
  0x3a   :  { %2174 = vmatpush3.bf16.msra.mxu0 %v2173_v33  ;;  %2054 = vmatprep.mubr.msk.f32.mxu0 %vm2305_vm0, %v2306_v1 }
  0x3b   :  { %2044 = vmatmul.mubr.msk.f32.vlgmr.msra.gmra.mrb[2].mxu1 %vm118_vm1, %v49_v34  ;;  %2175 = vmatprep.subr.bf16.mxu0 %v2304_v0 }
  0x3c   :  { %2180 = vmatpush3.bf16.msra.mxu1 %v2179_v35  ;;  %2065 = vmatprep.mubr.msk.f32.mxu1 %vm2305_vm0, %v2306_v1 }
  0x3d   :  { %2181 = vmatprep.subr.bf16.mxu1 %v2304_v0 }
  0x3e   :  { %2177 = vmatpush3.bf16.msra.mxu0 %v2176_v39 }
  0x3f   :  { %2068 = vmatprep.subr.mxu0 %v2306_v1 }
  0x40   :  { %2183 = vmatpush3.bf16.msra.mxu1 %v2182_v41 }
  0x41   :  { %2073 = vmatprep.subr.mxu1 %v2306_v1  ;;  %2055 = vmatmul.mubr.msk.f32.vlgmr.msra.gmra.mrb[4].mxu0 %vm118_vm1, %v50_v42 }
  0x42   :  { %2070 = vmatprep.mubr.msk.f32.mxu0 %vm2305_vm0, %v2306_v1 }
  0x43   :  { %2066 = vmatmul.mubr.msk.f32.vlgmr.msra.gmra.mrb[4].mxu1 %vm118_vm1, %v51_v43 }
  0x44   :  { %2075 = vmatprep.mubr.msk.f32.mxu1 %vm2305_vm0, %v2306_v1 }
 0x104   :  { %v188_v44 = vpop.f32.mrb[0].mxu0 }
 0x105   :  { %v2012_v45 = vpop.f32.mrb[1].mxu0  ;;  %v189_v50 = vadd.f32 %v1900_v48, %v188_v44 }
 0x106   :  { %v261_v46 = vpop.f32.mrb[0].mxu1 }
 0x107   :  { %v2023_v47 = vpop.f32.mrb[1].mxu1  ;;  %v585_v58 = vmul.f32 %v2408_v52, %v189_v50  ;;  %v586_v59 = vmul.f32 %v2413_v53, %v189_v50  ;;  %v587_v2 = vmul.f32 %v2427_v61, %v189_v50  ;;  %v588_v3 = vmul.f32 %v2432_v62, %v189_v50 }
 0x108   :  { %v262_v4 = vadd.f32 %v1901_v63, %v261_v46 }
 0x10a   :  { %v589_v5 = vmul.f32 %v2408_v52, %v262_v4  ;;  %v590_v6 = vmul.f32 %v2413_v53, %v262_v4  ;;  %v591_v7 = vmul.f32 %v2427_v61, %v262_v4  ;;  %v592_v8 = vmul.f32 %v2432_v62, %v262_v4 }
 0x10c   :  { %v334_v51 = vpop.f32.mrb[2].mxu0 }
 0x10d   :  { %v335_v54 = vadd.f32 %v1902_v49, %v334_v51  ;;  %v2034_v55 = vpop.f32.mrb[3].mxu0 }
 0x10e   :  { %v407_v56 = vpop.f32.mrb[2].mxu1 }
 0x10f   :  { %2069 = vmatpush3.xpose.msk.msra.mxu0 %vm118_vm1, %v335_v54  ;;  %2074 = vmatpush3.xpose.msk.msra.mxu1 %vm118_vm1, %v335_v54  ;;  %v2045_v57 = vpop.f32.mrb[3].mxu1  ;;  %v408_v0 = vadd.f32 %v1903_v60, %v407_v56 }
 0x110   :  { %2078 = vmatprep.subr.mxu0 %v2306_v1  ;;  %2083 = vmatprep.subr.mxu1 %v2306_v1 }
 0x112   :  { %2071 = vmatmul.mubr.msk.f32.vlgmr.msra.gmra.mrb[6].mxu0 %vm118_vm1, %v585_v58  ;;  %2076 = vmatmul.mubr.msk.f32.vlgmr.msra.gmra.mrb[6].mxu1 %vm118_vm1, %v586_v59 }
 0x113   :  { %2079 = vmatpush3.xpose.msk.msra.mxu0 %vm118_vm1, %v335_v54  ;;  %2084 = vmatpush3.xpose.msk.msra.mxu1 %vm118_vm1, %v335_v54 }
 0x114   :  { %2080 = vmatprep.mubr.msk.f32.mxu0 %vm2305_vm0, %v2306_v1  ;;  %2085 = vmatprep.mubr.msk.f32.mxu1 %vm2305_vm0, %v2306_v1  ;;  %v480_v10 = vpop.f32.mrb[4].mxu0 }
 0x115   :  { %2088 = vmatprep.subr.mxu0 %v2306_v1  ;;  %2093 = vmatprep.subr.mxu1 %v2306_v1  ;;  %v2482_v11 = vadd.f32 %v1904_v9, %v480_v10  ;;  %v2056_v12 = vpop.f32.mrb[5].mxu0 }
 0x116   :  { %2081 = vmatmul.mubr.msk.f32.vlgmr.msra.gmra.mrb[8].mxu0 %vm118_vm1, %v587_v2  ;;  %2086 = vmatmul.mubr.msk.f32.vlgmr.msra.gmra.mrb[8].mxu1 %vm118_vm1, %v588_v3  ;;  %v2484_v13 = vpop.f32.mrb[4].mxu1 }
 0x117   :  { %2089 = vmatpush3.xpose.msk.msra.mxu0 %vm118_vm1, %v408_v0  ;;  %2094 = vmatpush3.xpose.msk.msra.mxu1 %vm118_vm1, %v408_v0  ;;  %v2067_v14 = vpop.f32.mrb[5].mxu1 }
 0x118   :  { %2090 = vmatprep.mubr.msk.f32.mxu0 %vm2305_vm0, %v2306_v1  ;;  %2095 = vmatprep.mubr.msk.f32.mxu1 %vm2305_vm0, %v2306_v1 }
 0x119   :  { %2098 = vmatprep.subr.mxu0 %v2306_v1  ;;  %2103 = vmatprep.subr.mxu1 %v2306_v1 }
 0x11a   :  { %2091 = vmatmul.mubr.msk.f32.vlgmr.msra.gmra.mrb[10].mxu0 %vm118_vm1, %v589_v5  ;;  %2096 = vmatmul.mubr.msk.f32.vlgmr.msra.gmra.mrb[10].mxu1 %vm118_vm1, %v590_v6 }
 0x11b   :  { %2099 = vmatpush3.xpose.msk.msra.mxu0 %vm118_vm1, %v408_v0  ;;  %2104 = vmatpush3.xpose.msk.msra.mxu1 %vm118_vm1, %v408_v0 }
 0x11c   :  { %2100 = vmatprep.mubr.msk.f32.mxu0 %vm2305_vm0, %v2306_v1  ;;  %2105 = vmatprep.mubr.msk.f32.mxu1 %vm2305_vm0, %v2306_v1 }
 0x11d   :  { %2108 = vmatprep.subr.mxu0 %v2306_v1  ;;  %2113 = vmatprep.subr.mxu1 %v2306_v1 }
 0x11e   :  { %2101 = vmatmul.mubr.msk.f32.vlgmr.msra.gmra.mrb[12].mxu0 %vm118_vm1, %v591_v7  ;;  %2106 = vmatmul.mubr.msk.f32.vlgmr.msra.gmra.mrb[12].mxu1 %vm118_vm1, %v592_v8 }
 0x11f   :  { %2110 = vmatprep.mubr.msk.f32.mxu0 %vm2305_vm0, %v2306_v1  ;;  %2115 = vmatprep.mubr.msk.f32.mxu1 %vm2305_vm0, %v2306_v1 }
 0x120   :  { %2109 = vmatpush3.msra.mxu0 %v2482_v11  ;;  %2114 = vmatpush3.msra.mxu1 %v2482_v11 }
 0x121   :  { %2118 = vmatprep.subr.mxu0 %v2306_v1  ;;  %2123 = vmatprep.subr.mxu1 %v2306_v1 }
 0x1e5   :  { %v665_v15 = vpop.f32.mrb[6].mxu0  ;;  %v738_v16 = vpop.f32.mrb[6].mxu1 }
 0x1e6   :  { %v2072_v17 = vpop.f32.mrb[7].mxu0  ;;  %v2077_v18 = vpop.f32.mrb[7].mxu1  ;;  %v1184_v19 = vsel %vm1183_vm2, %v665_v15, -inf  ;;  %v1187_v24 = vsel %vm1183_vm2, %v738_v16, -inf }
 0x1e7   :  { %1185 = vmax.xlane.f32.xlu0 %v1184_v19 }
 0x1e9   :  { %v811_v20 = vpop.f32.mrb[8].mxu0  ;;  %v884_v21 = vpop.f32.mrb[8].mxu1 }
 0x1ea   :  { %v2082_v22 = vpop.f32.mrb[9].mxu0  ;;  %v2087_v23 = vpop.f32.mrb[9].mxu1  ;;  %v1190_v25 = vsel %vm1183_vm2, %v811_v20, -inf  ;;  %v1193_v30 = vsel %vm1183_vm2, %v884_v21, -inf }
 0x1eb   :  { %1188 = vmax.xlane.f32.xlu0 %v1187_v24  ;;  %1191 = vmax.xlane.f32.xlu1 %v1190_v25 }
 0x1ed   :  { %v960_v26 = vpop.f32.mrb[10].mxu0  ;;  %v1033_v27 = vpop.f32.mrb[10].mxu1 }
 0x1ee   :  { %v2092_v28 = vpop.f32.mrb[11].mxu0  ;;  %v2097_v29 = vpop.f32.mrb[11].mxu1  ;;  %v1196_v31 = vsel %vm1183_vm2, %v960_v26, -inf  ;;  %v1199_v36 = vsel %vm1183_vm2, %v1033_v27, -inf }
 0x1ef   :  { %1194 = vmax.xlane.f32.xlu1 %v1193_v30  ;;  %1197 = vmax.xlane.f32.xlu0 %v1196_v31 }
 0x1f1   :  { %v1106_v32 = vpop.f32.mrb[12].mxu0  ;;  %v1179_v33 = vpop.f32.mrb[12].mxu1 }
 0x1f2   :  { %v2102_v34 = vpop.f32.mrb[13].mxu0  ;;  %v2107_v35 = vpop.f32.mrb[13].mxu1  ;;  %v1202_v37 = vsel %vm1183_vm2, %v1106_v32, -inf  ;;  %v1205_v38 = vsel %vm1183_vm2, %v1179_v33, -inf }
 0x1f3   :  { %1200 = vmax.xlane.f32.xlu1 %v1199_v36  ;;  %1203 = vmax.xlane.f32.xlu0 %v1202_v37 }
 0x1f7   :  { %1206 = vmax.xlane.f32.xlu1 %v1205_v38 }
 0x274   :  { %v1186_v39 = vpop.xlane.xlu0 %1185 }
 0x275   :  { %v1208_v40 = vsub.f32 %v665_v15, %v1186_v39 }
 0x277   :  { %v1216_v41 = vmul.f32 1.442695, %v1208_v40 }
 0x278   :  { %v1189_v42 = vpop.xlane.xlu0 %1188  ;;  %v1192_v43 = vpop.xlane.xlu1 %1191 }
 0x279   :  { %2192 = vpow2.f32 %v1216_v41  ;;  %v1209_v44 = vsub.f32 %v738_v16, %v1189_v42  ;;  %v1210_v45 = vsub.f32 %v811_v20, %v1192_v43 }
 0x27b   :  { %v1218_v46 = vmul.f32 1.442695, %v1209_v44  ;;  %v1220_v47 = vmul.f32 1.442695, %v1210_v45 }
 0x27c   :  { %v1195_v48 = vpop.xlane.xlu1 %1194  ;;  %v1198_v49 = vpop.xlane.xlu0 %1197 }
 0x27d   :  { %2194 = vpow2.f32 %v1218_v46  ;;  %v1211_v50 = vsub.f32 %v884_v21, %v1195_v48  ;;  %v1212_v51 = vsub.f32 %v960_v26, %v1198_v49 }
 0x27e   :  { %2196 = vpow2.f32 %v1220_v47 }
 0x27f   :  { %v1222_v54 = vmul.f32 1.442695, %v1211_v50  ;;  %v1224_v55 = vmul.f32 1.442695, %v1212_v51 }
 0x280   :  { %v1201_v56 = vpop.xlane.xlu1 %1200  ;;  %v1204_v57 = vpop.xlane.xlu0 %1203 }
 0x281   :  { %2198 = vpow2.f32 %v1222_v54  ;;  %v1213_v58 = vsub.f32 %v1033_v27, %v1201_v56  ;;  %v1214_v59 = vsub.f32 %v1106_v32, %v1204_v57  ;;  %v1905_v32 = vld [vmem:[%s2571_s2 + $0x5] ss:$0 sm:$0xff]  ;;  %s2307_s2 = smov [#allocation7]  }
 0x282   :  { %2200 = vpow2.f32 %v1224_v55  ;;  %v554_v37 = vadd.f32 %v1905_v32, %v2484_v13  ;;  %s1887_s8 = sshll.u32 %s2307_s2, 4  ;;  %s1888_s8 = int_to_ptr.vmem [resolvable:$true] %s1887_s8 }
 0x283   :  { %v2193_v60 = vpop.eup %2192  ;;  %v1226_v63 = vmul.f32 1.442695, %v1213_v58  ;;  %v1228_v0 = vmul.f32 1.442695, %v1214_v59  ;;  %s2272_s9 = scalar_lea.vmem %s1888_s8, 256  ;;  %p2277_p3 = scmp.lt.s32.totalorder %s1888_s8, %s1888_s8 }
 0x284   :  { %v1207_v2 = vpop.xlane.xlu1 %1206  ;;  %v1232_v3 = vsel %vm1183_vm2, %v2193_v60, 0.0  ;;  %p2273_p2 = scmp.ne.s32.totalorder %s1888_s8, %s2272_s9  ;;  %p2278_p4 = scmp.lt.s32.totalorder %s2272_s9, %s2272_s9 }
 0x285   :  { %2202 = vpow2.f32 %v1226_v63  ;;  %v1215_v4 = vsub.f32 %v1179_v33, %v1207_v2  ;;  %1233 = vadd.xlane.f32.xlu0 %v1232_v3 }
 0x286   :  { %2204 = vpow2.f32 %v1228_v0  ;;  %p2279_p5 = por %p2278_p4, %p2277_p3 }
 0x287   :  { %v2195_v5 = vpop.eup %2194  ;;  %v1230_v6 = vmul.f32 1.442695, %v1215_v4 }
 0x288   :  { %v2197_v7 = vpop.eup %2196  ;;  %v1235_v8 = vsel %vm1183_vm2, %v2195_v5, 0.0  ;;  %p2280_p6 = pnand %p2279_p5, %p2273_p2 }
 0x289   :  { %2206 = vpow2.f32 %v1230_v6  ;;  %1236 = vadd.xlane.f32.xlu1 %v1235_v8  ;;  %v1238_v9 = vsel %vm1183_vm2, %v2197_v7, 0.0 }
 0x28a   :  { %1239 = vadd.xlane.f32.xlu0 %v1238_v9 }
 0x28b   :  { %v2199_v10 = vpop.eup %2198 }
 0x28c   :  { %v2201_v12 = vpop.eup %2200  ;;  %v1241_v14 = vsel %vm1183_vm2, %v2199_v10, 0.0 }
 0x28d   :  { %1242 = vadd.xlane.f32.xlu1 %v1241_v14  ;;  %v1244_v15 = vsel %vm1183_vm2, %v2201_v12, 0.0 }
 0x28e   :  { %1245 = vadd.xlane.f32.xlu0 %v1244_v15 }
 0x28f   :  { %v2203_v16 = vpop.eup %2202 }
 0x290   :  { %v2205_v17 = vpop.eup %2204  ;;  %v1247_v18 = vsel %vm1183_vm2, %v2203_v16, 0.0 }
 0x291   :  { %1248 = vadd.xlane.f32.xlu1 %v1247_v18  ;;  %v1250_v19 = vsel %vm1183_vm2, %v2205_v17, 0.0 }
 0x292   :  { %1251 = vadd.xlane.f32.xlu0 %v1250_v19 }
 0x293   :  { %v2207_v20 = vpop.eup %2206 }
 0x294   :  { %v1253_v21 = vsel %vm1183_vm2, %v2207_v20, 0.0 }
 0x295   :  { %1254 = vadd.xlane.f32.xlu1 %v1253_v21 }
 0x312   :  { %v1234_v22 = vpop.xlane.xlu0 %1233 }
 0x313   :  { %2208 = vrcp.f32 %v1234_v22 }
 0x316   :  { %v1237_v23 = vpop.xlane.xlu1 %1236 }
 0x317   :  { %2210 = vrcp.f32 %v1237_v23  ;;  %v1240_v24 = vpop.xlane.xlu0 %1239 }
 0x318   :  { %2212 = vrcp.f32 %v1240_v24 }
 0x31a   :  { %v1243_v25 = vpop.xlane.xlu1 %1242 }
 0x31b   :  { %2214 = vrcp.f32 %v1243_v25  ;;  %v1246_v26 = vpop.xlane.xlu0 %1245 }
 0x31c   :  { %2216 = vrcp.f32 %v1246_v26 }
 0x31d   :  { %v2209_v27 = vpop.eup %2208 }
 0x31e   :  { %v1257_v28 = vmul.f32 %v2209_v27, %v2193_v60  ;;  %v1249_v29 = vpop.xlane.xlu1 %1248 }
 0x31f   :  { %2218 = vrcp.f32 %v1249_v29  ;;  %v1252_v30 = vpop.xlane.xlu0 %1251 }
 0x320   :  { %2220 = vrcp.f32 %v1252_v30  ;;  %2111 = vmatmul.mubr.msk.f32.vlgmr.msra.gmra.mrb[14].mxu0 %vm1183_vm2, %v1257_v28 }
 0x321   :  { %v2211_v31 = vpop.eup %2210  ;;  %2119 = vmatpush3.msra.mxu0 %v2482_v11  ;;  %2120 = vmatprep.mubr.msk.f32.mxu0 %vm2305_vm0, %v2306_v1 }
 0x322   :  { %v2213_v33 = vpop.eup %2212  ;;  %v1259_v34 = vmul.f32 %v2211_v31, %v2195_v5  ;;  %v1255_v35 = vpop.xlane.xlu1 %1254  ;;  %2128 = vmatprep.subr.mxu0 %v2306_v1 }
 0x323   :  { %v1261_v36 = vmul.f32 %v2213_v33, %v2197_v7  ;;  %2222 = vrcp.f32 %v1255_v35 }
 0x324   :  { %2116 = vmatmul.mubr.msk.f32.vlgmr.msra.gmra.mrb[14].mxu1 %vm1183_vm2, %v1259_v34 }
 0x325   :  { %v2215_v38 = vpop.eup %2214  ;;  %2121 = vmatmul.mubr.msk.f32.vlgmr.msra.gmra.mrb[16].mxu0 %vm1183_vm2, %v1261_v36  ;;  %2124 = vmatpush3.msra.mxu1 %v2482_v11 }
 0x326   :  { %v2217_v39 = vpop.eup %2216  ;;  %v1263_v40 = vmul.f32 %v2215_v38, %v2199_v10  ;;  %2129 = vmatpush3.msra.mxu0 %v554_v37  ;;  %2125 = vmatprep.mubr.msk.f32.mxu1 %vm2305_vm0, %v2306_v1 }
 0x327   :  { %v1265_v41 = vmul.f32 %v2217_v39, %v2201_v12  ;;  %2130 = vmatprep.mubr.msk.f32.mxu0 %vm2305_vm0, %v2306_v1  ;;  %2133 = vmatprep.subr.mxu1 %v2306_v1 }
 0x328   :  { %2138 = vmatprep.subr.mxu0 %v2306_v1  ;;  %2126 = vmatmul.mubr.msk.f32.vlgmr.msra.gmra.mrb[16].mxu1 %vm1183_vm2, %v1263_v40 }
 0x329   :  { %v2219_v13 = vpop.eup %2218  ;;  %2131 = vmatmul.mubr.msk.f32.vlgmr.msra.gmra.mrb[18].mxu0 %vm1183_vm2, %v1265_v41  ;;  %2134 = vmatpush3.msra.mxu1 %v554_v37 }
 0x32a   :  { %v2221_v11 = vpop.eup %2220  ;;  %v1267_v42 = vmul.f32 %v2219_v13, %v2203_v16  ;;  %2139 = vmatpush3.msra.mxu0 %v554_v37  ;;  %2135 = vmatprep.mubr.msk.f32.mxu1 %vm2305_vm0, %v2306_v1 }
 0x32b   :  { %v1269_v43 = vmul.f32 %v2221_v11, %v2205_v17  ;;  %2140 = vmatprep.mubr.msk.f32.mxu0 %vm2305_vm0, %v2306_v1  ;;  %2143 = vmatprep.subr.mxu1 %v2306_v1 }
 0x32c   :  { %2136 = vmatmul.mubr.msk.f32.vlgmr.msra.gmra.mrb[18].mxu1 %vm1183_vm2, %v1267_v42 }
 0x32d   :  { %v2223_v44 = vpop.eup %2222  ;;  %2141 = vmatmul.mubr.msk.f32.vlgmr.msra.gmra.mrb[20].mxu0 %vm1183_vm2, %v1269_v43  ;;  %2144 = vmatpush3.msra.mxu1 %v554_v37 }
 0x32e   :  { %v1271_v45 = vmul.f32 %v2223_v44, %v2207_v20  ;;  %2145 = vmatprep.mubr.msk.f32.mxu1 %vm2305_vm0, %v2306_v1 }
 0x330   :  { %2146 = vmatmul.mubr.msk.f32.vlgmr.msra.gmra.mrb[20].mxu1 %vm1183_vm2, %v1271_v45 }
 0x3f3   :  { %v1341_v46 = vpop.f32.mrb[14].mxu0 }
 0x3f4   :  { %v2112_v47 = vpop.f32.mrb[15].mxu0  ;;  %v1856_v48 = vmul.f32 %v2408_v52, %v1341_v46 }
 0x3f6   :  { %v1864_v57 = vsel %vm118_vm1, %v1856_v48, 0.0 }
 0x3f7   :  { %v1414_v49 = vpop.f32.mrb[14].mxu1 }
 0x3f8   :  { %v1857_v50 = vmul.f32 %v2413_v53, %v1414_v49  ;;  %v1487_v51 = vpop.f32.mrb[16].mxu0  ;;  %v2117_v54 = vpop.f32.mrb[15].mxu1 }
 0x3f9   :  { %v1858_v55 = vmul.f32 %v2427_v61, %v1487_v51  ;;  %v2122_v56 = vpop.f32.mrb[17].mxu0 }
 0x3fa   :  { %v1865_v58 = vsel %vm118_vm1, %v1857_v50, 0.0 }
 0x3fb   :  { %v1866_v59 = vadd.f32 %v1865_v58, %v1864_v57  ;;  %v1560_v1 = vpop.f32.mrb[16].mxu1  ;;  %v1867_v60 = vsel %vm118_vm1, %v1858_v55, 0.0 }
 0x3fc   :  { %v1859_v63 = vmul.f32 %v2432_v62, %v1560_v1  ;;  %v1633_v0 = vpop.f32.mrb[18].mxu0  ;;  %v2127_v2 = vpop.f32.mrb[17].mxu1 }
 0x3fd   :  { %v1868_v3 = vadd.f32 %v1867_v60, %v1866_v59  ;;  %v2132_v4 = vpop.f32.mrb[19].mxu0  ;;  %v1860_v6 = vmul.f32 %v2408_v52, %v1633_v0 }
 0x3fe   :  { %v1869_v5 = vsel %vm118_vm1, %v1859_v63, 0.0 }
 0x3ff   :  { %v1870_v7 = vadd.f32 %v1869_v5, %v1868_v3  ;;  %v1706_v8 = vpop.f32.mrb[18].mxu1  ;;  %v1871_v16 = vsel %vm118_vm1, %v1860_v6, 0.0 }
 0x400   :  { %v1861_v9 = vmul.f32 %v2413_v53, %v1706_v8  ;;  %v1779_v10 = vpop.f32.mrb[20].mxu0  ;;  %v2137_v12 = vpop.f32.mrb[19].mxu1 }
 0x401   :  { %2224 = vtanh.f32 %v1870_v7  ;;  %v1862_v14 = vmul.f32 %v2427_v61, %v1779_v10  ;;  %v2142_v15 = vpop.f32.mrb[21].mxu0 }
 0x402   :  { %v1872_v17 = vsel %vm118_vm1, %v1861_v9, 0.0 }
 0x403   :  { %v1873_v18 = vadd.f32 %v1872_v17, %v1871_v16  ;;  %v1852_v19 = vpop.f32.mrb[20].mxu1  ;;  %v1874_v20 = vsel %vm118_vm1, %v1862_v14, 0.0 }
 0x404   :  { %v1863_v52 = vmul.f32 %v2432_v62, %v1852_v19  ;;  %v2147_v21 = vpop.f32.mrb[21].mxu1 }
 0x405   :  { %v1875_v22 = vadd.f32 %v1874_v20, %v1873_v18 }
 0x406   :  { %v1876_v53 = vsel %vm118_vm1, %v1863_v52, 0.0 }
 0x407   :  { %v1877_v23 = vadd.f32 %v1876_v53, %v1875_v22 }
 0x409   :  { %2226 = vtanh.f32 %v1877_v23 }
 0x40b   :  { %v2225_v24 = vpop.eup %2224 }
 0x40c   :  { %1880 = vst.msk [vmem:[#allocation7] sm:$0xff] %vm118_vm1, %v2225_v24 }
 0x413   :  { %v2227_v61 = vpop.eup %2226 }
 0x414   :  { %1881 = vst.msk [vmem:[#allocation7 + $0x8] sm:$0xff] %vm118_vm1, %v2227_v61 }
 0x415   :  { %2283 = shalt.err (!%p2280_p6)
}
 0x416   :  { %s2284_s12 = scalar_lea.hbm %s2573_s4, 256 }
 0x417   :  { %p2285_p7 = scmp.ne.s32.totalorder %s2573_s4, %s2284_s12  ;;  %p2288_p8 = scmp.lt.u32.totalorder %s2284_s12, %s2573_s4 }
 0x419   :  { %p2290_p9 = pnand %p2288_p8, %p2285_p7 }
 0x41b   :  { %2293 = shalt.err (!%p2290_p9)
}
 0x41c   :  { %1893 = dma.vmem_to_hbm [thread:$0]  %s1888_s8, 256, %s2573_s4, [#allocation4], %s2301_s25, %s2301_s25, %s2302_s26  }
 0x41d   :  { %2298 = dma.done.wait [#allocation4], 256  }
 0x41e   :  { %2299 = vsyncadd [#allocation4], 4294967040 }
 0x41f   :  { %1897 = vsyncpa [#allocation3], 1 }
 0x420   :  { %1898 = vsyncpa [#allocation6], 1 }
 0x421   :  { %1899 = vsyncpa [#allocation4], 1 }

</bundles_post_ra>
